<compile_context>
chip_gen: v5e
topology: v5e:2x2
jax: 0.10.0
libtpu: 0.0.40
codegen_flags: <defaults>
</compile_context>

<pallas_src>
import numpy as np
import jax
import jax.numpy as jnp
from jax.experimental import pallas as pl
from jax.experimental.pallas import tpu as pltpu

V_PER_GRAPH = 21     # vertices per graph (V must be 21)
E_PER_GRAPH = 6      # "edge nodes" (targets) per graph
NEG_SLOPE = 0.2      # GATv2 leaky-relu slope
BN_EPS = 1e-5

# incidence matrix from get_hi(): ADJ = incidence_matrix_single = M.T
# ADJ[r, c] == 1  <=>  target node (6g + r) receives a message from source
# node (21g + c) in every graph g.
_M = np.array([[1, 0, 0, 0, 1, 0],
               [1, 1, 0, 0, 0, 1],
               [1, 0, 1, 0, 0, 1],
               [1, 0, 0, 1, 0, 0],
               [1, 0, 0, 0, 1, 0],
               [0, 1, 1, 0, 0, 1]], dtype=np.float32)
ADJ = _M.T  # (6, 6)


def _round_up(v, m):
    return ((v + m - 1) // m) * m


# --------------------------------------------------------------------------
# Kernel 1: fused projections  [x_l | x_r | down] = x @ [Wl | Wr | Wdown] + b
# (b_l has the GATv2 output bias folded in, b_r has it subtracted — exact.)
# --------------------------------------------------------------------------
def _proj_kernel(x_ref, w_ref, b_ref, xl_ref, xr_ref, d_ref):
    acc = jnp.dot(x_ref[...], w_ref[...],
                  preferred_element_type=jnp.float32) + b_ref[...]
    cout = xl_ref.shape[1]
    xl_ref[...] = acc[:, :cout]
    xr_ref[...] = acc[:, cout:2 * cout]
    d_ref[...] = acc[:, 2 * cout:3 * cout]


def fused_projections(x_nodes, w_all, b_all, cout, *, block_rows=1024):
    n, cin = x_nodes.shape
    w_tot = w_all.shape[1]
    br = max(8, min(block_rows, _round_up(n, 8)))
    n_pad = _round_up(n, br)
    x_p = jnp.pad(x_nodes, ((0, n_pad - n), (0, 0))) if n_pad != n else x_nodes

    xl, xr, d = pl.pallas_call(
        _proj_kernel,
        out_shape=(jax.ShapeDtypeStruct((n_pad, cout), jnp.float32),) * 3,
        grid_spec=pltpu.PrefetchScalarGridSpec(
            num_scalar_prefetch=0,
            grid=(n_pad // br,),
            in_specs=[pl.BlockSpec((br, cin), lambda i: (i, 0)),
                      pl.BlockSpec((cin, w_tot), lambda i: (0, 0)),
                      pl.BlockSpec((1, w_tot), lambda i: (0, 0))],
            out_specs=[pl.BlockSpec((br, cout), lambda i: (i, 0))] * 3),
        compiler_params=pltpu.CompilerParams(
            dimension_semantics=("parallel",)),
    )(x_p, w_all, b_all)
    return xl[:n], xr[:n], d[:n]


# --------------------------------------------------------------------------
# Kernel 2: per-graph GATv2 attention + aggregation (dense masked softmax,
# self-loops included).  The (6,6) adjacency is broadcast once; the graph-0
# self-loop removal is reconstructed in-kernel (no (G,6,6) HBM mask array).
# Nodes >= 6*G only have their self-loop (handled in the glue: output = x_l).
# --------------------------------------------------------------------------
def _attn_kernel(src_ref, xlt_ref, xrt_ref, att_ref, adj_ref, out_ref):
    gb = src_ref.shape[0]
    src = src_ref[...]   # (gb, 6, C)  x_l of source vertices 0..5 of each graph
    xlt = xlt_ref[...]   # (gb, 6, C)  x_l at the target nodes (self-loop msg)
    xrt = xrt_ref[...]   # (gb, 6, C)  x_r at the target nodes
    att = att_ref[...]   # (1, C)
    adj = adj_ref[...]   # (6, 6)

    # edge mask: adjacency for every graph; graph 0's true self-loop edges
    # (src == tgt, only possible for g == 0, c == r) are removed before the
    # uniform self loops are re-added — matches remove/add_self_loops.
    g_idx = (pl.program_id(0) * gb
             + jax.lax.broadcasted_iota(jnp.int32, (gb, 6, 6), 0))
    is_diag = (jax.lax.broadcasted_iota(jnp.int32, (gb, 6, 6), 1)
               == jax.lax.broadcasted_iota(jnp.int32, (gb, 6, 6), 2))
    m = jnp.where((g_idx == 0) & is_diag, 0.0, adj[None, :, :])   # (gb,6,6)

    def leaky(z):
        return jnp.where(z > 0, z, NEG_SLOPE * z)

    # bipartite edge logits  e[g, r, c] = leaky(x_l[src c] + x_r[tgt r]) . att
    s = leaky(src[:, None, :, :] + xrt[:, :, None, :])             # (gb,6,6,C)
    e = jnp.sum(s * att[None, None, :, :], axis=-1)                # (gb,6,6)
    # self-loop logits
    e_self = jnp.sum(leaky(xlt + xrt) * att[None, :, :], axis=-1)  # (gb,6)

    e_m = jnp.where(m > 0, e, -1e30)
    mx = jnp.maximum(jnp.max(e_m, axis=-1), e_self)                # (gb,6)
    p = jnp.where(m > 0, jnp.exp(e - mx[:, :, None]), 0.0)         # (gb,6,6)
    p_self = jnp.exp(e_self - mx)                                  # (gb,6)
    denom = jnp.sum(p, axis=-1) + p_self                           # (gb,6)

    num = jnp.einsum('grc,gck->grk', p, src,
                     preferred_element_type=jnp.float32)
    num = num + p_self[:, :, None] * xlt
    out_ref[...] = num / denom[:, :, None]


def gat_attention(x_l, x_r, att, adj, G, *, g_block=128):
    C = x_l.shape[1]
    n_tgt = E_PER_GRAPH * G
    src = x_l[:V_PER_GRAPH * G].reshape(G, V_PER_GRAPH, C)[:, :E_PER_GRAPH, :]
    xlt = x_l[:n_tgt].reshape(G, E_PER_GRAPH, C)
    xrt = x_r[:n_tgt].reshape(G, E_PER_GRAPH, C)

    gb = max(8, min(g_block, _round_up(G, 8)))
    g_pad = _round_up(G, gb)
    if g_pad != G:
        pad = ((0, g_pad - G), (0, 0), (0, 0))
        src, xlt, xrt = jnp.pad(src, pad), jnp.pad(xlt, pad), jnp.pad(xrt, pad)

    agg = pl.pallas_call(
        _attn_kernel,
        out_shape=jax.ShapeDtypeStruct((g_pad, E_PER_GRAPH, C), jnp.float32),
        grid_spec=pltpu.PrefetchScalarGridSpec(
            num_scalar_prefetch=0,
            grid=(g_pad // gb,),
            in_specs=[pl.BlockSpec((gb, E_PER_GRAPH, C), lambda i: (i, 0, 0)),
                      pl.BlockSpec((gb, E_PER_GRAPH, C), lambda i: (i, 0, 0)),
                      pl.BlockSpec((gb, E_PER_GRAPH, C), lambda i: (i, 0, 0)),
                      pl.BlockSpec((1, C), lambda i: (0, 0)),
                      pl.BlockSpec((E_PER_GRAPH, E_PER_GRAPH),
                                   lambda i: (0, 0))],
            out_specs=pl.BlockSpec((gb, E_PER_GRAPH, C),
                                   lambda i: (i, 0, 0))),
        compiler_params=pltpu.CompilerParams(
            dimension_semantics=("parallel",)),
    )(src, xlt, xrt, att, adj)
    return agg[:G]


# --------------------------------------------------------------------------
# Kernel 3a: tiled global per-channel stats (sum, sum of squares) for y and d.
# Accumulator outputs (same block every step) — grid axis is a reduction.
# Zero-padded rows contribute 0 to the sums, so dividing by the true N is exact.
# --------------------------------------------------------------------------
def _stats_kernel(y_ref, d_ref, sy_ref, syy_ref, sd_ref, sdd_ref):
    @pl.when(pl.program_id(0) == 0)
    def _():
        sy_ref[...] = jnp.zeros_like(sy_ref)
        syy_ref[...] = jnp.zeros_like(syy_ref)
        sd_ref[...] = jnp.zeros_like(sd_ref)
        sdd_ref[...] = jnp.zeros_like(sdd_ref)

    y = y_ref[...]
    d = d_ref[...]
    sy_ref[...] += jnp.sum(y, axis=0, keepdims=True)
    syy_ref[...] += jnp.sum(y * y, axis=0, keepdims=True)
    sd_ref[...] += jnp.sum(d, axis=0, keepdims=True)
    sdd_ref[...] += jnp.sum(d * d, axis=0, keepdims=True)


# --------------------------------------------------------------------------
# Kernel 3b: tiled normalize + residual-add + ReLU.
#   out = relu(y * a_y + d * a_d + c)  with per-channel a_y, a_d, c.
# --------------------------------------------------------------------------
def _norm_add_relu_kernel(y_ref, d_ref, ay_ref, ad_ref, c_ref, o_ref):
    o_ref[...] = jnp.maximum(
        y_ref[...] * ay_ref[...] + d_ref[...] * ad_ref[...] + c_ref[...], 0.0)


def bn_residual_relu(y_cl, d_cl, n_valid, gamma_y, gamma_d, *, block_rows=2048):
    n, cout = y_cl.shape
    br = max(8, min(block_rows, _round_up(n, 8)))
    n_pad = _round_up(n, br)
    if n_pad != n:
        y_p = jnp.pad(y_cl, ((0, n_pad - n), (0, 0)))
        d_p = jnp.pad(d_cl, ((0, n_pad - n), (0, 0)))
    else:
        y_p, d_p = y_cl, d_cl
    grid = (n_pad // br,)

    # Pass A: global per-channel statistics (reduction over all rows).
    sy, syy, sd, sdd = pl.pallas_call(
        _stats_kernel,
        out_shape=(jax.ShapeDtypeStruct((1, cout), jnp.float32),) * 4,
        grid_spec=pltpu.PrefetchScalarGridSpec(
            num_scalar_prefetch=0, grid=grid,
            in_specs=[pl.BlockSpec((br, cout), lambda i: (i, 0))] * 2,
            out_specs=[pl.BlockSpec((1, cout), lambda i: (0, 0))] * 4),
        compiler_params=pltpu.CompilerParams(
            dimension_semantics=("arbitrary",)),
    )(y_p, d_p)

    inv_n = 1.0 / float(n_valid)
    mu_y = sy * inv_n
    var_y = jnp.maximum(syy * inv_n - mu_y * mu_y, 0.0)
    mu_d = sd * inv_n
    var_d = jnp.maximum(sdd * inv_n - mu_d * mu_d, 0.0)
    a_y = gamma_y * jax.lax.rsqrt(var_y + BN_EPS)   # main BN: gamma=1e-6, beta=0
    a_d = gamma_d * jax.lax.rsqrt(var_d + BN_EPS)   # down BN: gamma=1,    beta=0
    c = -(mu_y * a_y + mu_d * a_d)

    # Pass B: elementwise normalize + add + ReLU (parallel over row blocks).
    out = pl.pallas_call(
        _norm_add_relu_kernel,
        out_shape=jax.ShapeDtypeStruct((n_pad, cout), jnp.float32),
        grid_spec=pltpu.PrefetchScalarGridSpec(
            num_scalar_prefetch=0, grid=grid,
            in_specs=[pl.BlockSpec((br, cout), lambda i: (i, 0)),
                      pl.BlockSpec((br, cout), lambda i: (i, 0)),
                      pl.BlockSpec((1, cout), lambda i: (0, 0)),
                      pl.BlockSpec((1, cout), lambda i: (0, 0)),
                      pl.BlockSpec((1, cout), lambda i: (0, 0))],
            out_specs=pl.BlockSpec((br, cout), lambda i: (i, 0))),
        compiler_params=pltpu.CompilerParams(
            dimension_semantics=("parallel",)),
    )(y_p, d_p, a_y, a_d, c)
    return out[:n]


# --------------------------------------------------------------------------
# Full forward (layout glue in plain JAX, hot paths in the Pallas kernels).
# Implements the residual branch for in_channels != out_channels
# (Conv2d 1x1 + BatchNorm2d), which is what the demo config exercises.
# --------------------------------------------------------------------------
def unit_gcn_forward(x, params):
    NM, Cin, T, V = x.shape
    assert V == V_PER_GRAPH, "unit_gcn graph structure requires V == 21"
    G = NM * T
    N = NM * T * V
    Cout = params['w_l'].shape[0]

    # rearrange 'nm c t v -> (nm t v) c'
    x_nodes = x.transpose(0, 2, 3, 1).reshape(N, Cin)

    # Fold the GATv2 output bias into the projection biases (exact: softmax
    # weights sum to 1, and the bias cancels inside x_l[src] + x_r[dst]).
    bias = params['bias'].reshape(1, Cout)
    w_all = jnp.concatenate(
        [params['w_l'].T, params['w_r'].T, params['w_down'].T], axis=1)
    b_all = jnp.concatenate(
        [params['b_l'].reshape(1, Cout) + bias,
         params['b_r'].reshape(1, Cout) - bias,
         params['b_down'].reshape(1, Cout)], axis=1)

    # Kernel 1: fused projections (x read once, one MXU push, 3 outputs).
    xl, xr, d = fused_projections(x_nodes, w_all, b_all, Cout)

    # Kernel 2: GATv2 attention + aggregation.
    agg = gat_attention(xl, xr, params['att'].reshape(1, Cout),
                        jnp.asarray(ADJ), G)

    # Nodes >= 6*G only have their self-loop: output is x_l itself
    # (bias already folded in).
    n_tgt = E_PER_GRAPH * G
    z = jnp.concatenate([agg.reshape(n_tgt, Cout), xl[n_tgt:]], axis=0)

    # y = z.view(NM, -1, T, V)  (torch row-major view scramble), then
    # channels-last flattening for the fused BN/residual/ReLU stage.
    # TODO(synk): the view scramble is a full element permutation — kept as an
    # XLA reshape/transpose since it has no clean BlockSpec index_map form.
    y_cl = z.reshape(NM, Cout, T, V).transpose(0, 2, 3, 1).reshape(N, Cout)

    # Kernel 3: tiled two-pass BN (train-mode batch stats) + residual + ReLU.
    out_cl = bn_residual_relu(y_cl, d, N, 1e-6, 1.0)

    return out_cl.reshape(NM, T, V, Cout).transpose(0, 3, 1, 2)


# --------------------------------------------------------------------------
# Pure-JAX reference (edge-list formulation, mirrors PyG GATv2Conv) for check.
# --------------------------------------------------------------------------
def _bn_train_ref(y4d, gamma, beta):
    mu = jnp.mean(y4d, axis=(0, 2, 3), keepdims=True)
    var = jnp.mean((y4d - mu) ** 2, axis=(0, 2, 3), keepdims=True)
    return ((y4d - mu) / jnp.sqrt(var + BN_EPS)
            * gamma.reshape(1, -1, 1, 1) + beta.reshape(1, -1, 1, 1))


def unit_gcn_reference(x, params):
    NM, Cin, T, V = x.shape
    G, N = NM * T, NM * T * V
    Cout = params['w_l'].shape[0]
    xn = x.transpose(0, 2, 3, 1).reshape(N, Cin)
    xl = xn @ params['w_l'].T + params['b_l']
    xr = xn @ params['w_r'].T + params['b_r']

    r_idx, c_idx = np.nonzero(ADJ)
    g = np.arange(G)
    src = (c_idx[None, :] + V_PER_GRAPH * g[:, None]).reshape(-1)
    tgt = (r_idx[None, :] + E_PER_GRAPH * g[:, None]).reshape(-1)
    keep = src != tgt                      # remove_self_loops
    src = np.concatenate([src[keep], np.arange(N)])   # add_self_loops
    tgt = np.concatenate([tgt[keep], np.arange(N)])
    src, tgt = jnp.asarray(src), jnp.asarray(tgt)

    att = params['att'].reshape(Cout)
    feat = xl[src] + xr[tgt]
    feat = jnp.where(feat > 0, feat, NEG_SLOPE * feat)
    logits = feat @ att
    mx = jax.ops.segment_max(logits, tgt, num_segments=N)
    alpha = jnp.exp(logits - mx[tgt])
    denom = jax.ops.segment_sum(alpha, tgt, num_segments=N)
    alpha = alpha / denom[tgt]
    z = jax.ops.segment_sum(alpha[:, None] * xl[src], tgt, num_segments=N)
    z = z + params['bias']

    y4d = z.reshape(NM, Cout, T, V)
    ones = jnp.ones((Cout,), jnp.float32)
    zeros = jnp.zeros((Cout,), jnp.float32)
    y = _bn_train_ref(y4d, 1e-6 * ones, zeros)
    down = (jnp.einsum('oc,nctv->notv', params['w_down'], x)
            + params['b_down'].reshape(1, -1, 1, 1))
    down = _bn_train_ref(down, ones, zeros)
    return jnp.maximum(y + down, 0.0)


if __name__ == "__main__":
    NM, Cin, Cout, T, V = 2, 4, 8, 8, 21   # V must be 21 for get_hi()
    key = jax.random.PRNGKey(0)
    ks = jax.random.split(key, 8)
    x = jax.random.normal(ks[0], (NM, Cin, T, V), jnp.float32)
    params = dict(
        w_l=0.5 * jax.random.normal(ks[1], (Cout, Cin), jnp.float32),
        b_l=0.1 * jax.random.normal(ks[2], (Cout,), jnp.float32),
        w_r=0.5 * jax.random.normal(ks[3], (Cout, Cin), jnp.float32),
        b_r=0.1 * jax.random.normal(ks[4], (Cout,), jnp.float32),
        att=jax.random.normal(ks[5], (Cout,), jnp.float32),      # GATv2 att (1,1,C)
        bias=0.1 * jax.random.normal(ks[6], (Cout,), jnp.float32),
        w_down=0.5 * jax.random.normal(ks[7], (Cout, Cin), jnp.float32),
        b_down=jnp.zeros((Cout,), jnp.float32),                  # conv_init -> 0
    )

    out = jax.block_until_ready(unit_gcn_forward(x, params))
    ref = jax.block_until_ready(unit_gcn_reference(x, params))
    np.testing.assert_allclose(np.asarray(out), np.asarray(ref),
                               rtol=1e-4, atol=1e-4)
    assert out.shape == (NM, Cout, T, V)
    print("KERNEL_OK")
</pallas_src>

<mosaic_0001>
module attributes {stable_mosaic.version = 11 : i64} {
  func.func @_proj_kernel(%arg0: i32, %arg1: memref<336x4xf32, #tpu.memory_space<vmem>>, %arg2: memref<4x24xf32, #tpu.memory_space<vmem>>, %arg3: memref<1x24xf32, #tpu.memory_space<vmem>>, %arg4: memref<336x8xf32, #tpu.memory_space<vmem>>, %arg5: memref<336x8xf32, #tpu.memory_space<vmem>>, %arg6: memref<336x8xf32, #tpu.memory_space<vmem>>) attributes {dimension_semantics = [#tpu.dimension_semantics<parallel>], iteration_bounds = array<i64: 1>, scalar_prefetch = 0 : i64, scratch_operands = 0 : i64, tpu.core_type = #tpu.core_type<tc>, window_params = [{transform_indices = @transform_0, window_bounds = array<i64: 336, 4>}, {pipeline_mode = #tpu.pipeline_mode<synchronous>, transform_indices = @transform_1, window_bounds = array<i64: 4, 24>}, {pipeline_mode = #tpu.pipeline_mode<synchronous>, transform_indices = @transform_2, window_bounds = array<i64: 1, 24>}, {transform_indices = @transform_3, window_bounds = array<i64: 336, 8>}, {transform_indices = @transform_4, window_bounds = array<i64: 336, 8>}, {transform_indices = @transform_5, window_bounds = array<i64: 336, 8>}]} {
    %c0 = arith.constant 0 : index
    %c0_0 = arith.constant 0 : index
    %0 = vector.load %arg1[%c0, %c0_0] : memref<336x4xf32, #tpu.memory_space<vmem>>, vector<336x4xf32>
    %c0_1 = arith.constant 0 : index
    %c0_2 = arith.constant 0 : index
    %1 = vector.load %arg2[%c0_1, %c0_2] : memref<4x24xf32, #tpu.memory_space<vmem>>, vector<4x24xf32>
    %cst = arith.constant dense<0.000000e+00> : vector<336x24xf32>
    %2 = tpu.matmul %0, %1, %cst {dimension_numbers = #tpu.dot_dimension_numbers<[1], [0], [0], [1], [0, 0, 1, 1], [], []>} : vector<336x4xf32>, vector<4x24xf32>, vector<336x24xf32> -> vector<336x24xf32>
    %c0_3 = arith.constant 0 : index
    %c0_4 = arith.constant 0 : index
    %3 = vector.load %arg3[%c0_3, %c0_4] : memref<1x24xf32, #tpu.memory_space<vmem>>, vector<1x24xf32>
    %4 = vector.broadcast %3 : vector<1x24xf32> to vector<336x24xf32>
    %5 = arith.addf %2, %4 : vector<336x24xf32>
    %6 = vector.extract_strided_slice %5 {offsets = [0, 0], sizes = [336, 8], strides = [1, 1]} : vector<336x24xf32> to vector<336x8xf32>
    %c0_5 = arith.constant 0 : index
    %c0_6 = arith.constant 0 : index
    %7 = vector.load %arg4[%c0_5, %c0_6] : memref<336x8xf32, #tpu.memory_space<vmem>>, vector<336x8xf32>
    tpu.vector_store %arg4[%c0_5, %c0_6], %6 {strides = array<i32>} : memref<336x8xf32, #tpu.memory_space<vmem>>, vector<336x8xf32>,
    %8 = vector.extract_strided_slice %5 {offsets = [0, 8], sizes = [336, 8], strides = [1, 1]} : vector<336x24xf32> to vector<336x8xf32>
    %c0_7 = arith.constant 0 : index
    %c0_8 = arith.constant 0 : index
    %9 = vector.load %arg5[%c0_7, %c0_8] : memref<336x8xf32, #tpu.memory_space<vmem>>, vector<336x8xf32>
    tpu.vector_store %arg5[%c0_7, %c0_8], %8 {strides = array<i32>} : memref<336x8xf32, #tpu.memory_space<vmem>>, vector<336x8xf32>,
    %10 = vector.extract_strided_slice %5 {offsets = [0, 16], sizes = [336, 8], strides = [1, 1]} : vector<336x24xf32> to vector<336x8xf32>
    %c0_9 = arith.constant 0 : index
    %c0_10 = arith.constant 0 : index
    %11 = vector.load %arg6[%c0_9, %c0_10] : memref<336x8xf32, #tpu.memory_space<vmem>>, vector<336x8xf32>
    tpu.vector_store %arg6[%c0_9, %c0_10], %10 {strides = array<i32>} : memref<336x8xf32, #tpu.memory_space<vmem>>, vector<336x8xf32>,
    return
  }
  func.func @transform_0(%arg0: i32) -> (i32, i32) {
    %c0_i32 = arith.constant 0 : i32
    %c0_i32_0 = arith.constant 0 : i32
    return %arg0, %c0_i32 : i32, i32
  }
  func.func @transform_1(%arg0: i32) -> (i32, i32) {
    %c0_i32 = arith.constant 0 : i32
    %c0_i32_0 = arith.constant 0 : i32
    %c0_i32_1 = arith.constant 0 : i32
    return %c0_i32, %c0_i32_0 : i32, i32
  }
  func.func @transform_2(%arg0: i32) -> (i32, i32) {
    %c0_i32 = arith.constant 0 : i32
    %c0_i32_0 = arith.constant 0 : i32
    %c0_i32_1 = arith.constant 0 : i32
    return %c0_i32, %c0_i32_0 : i32, i32
  }
  func.func @transform_3(%arg0: i32) -> (i32, i32) {
    %c0_i32 = arith.constant 0 : i32
    %c0_i32_0 = arith.constant 0 : i32
    return %arg0, %c0_i32 : i32, i32
  }
  func.func @transform_4(%arg0: i32) -> (i32, i32) {
    %c0_i32 = arith.constant 0 : i32
    %c0_i32_0 = arith.constant 0 : i32
    return %arg0, %c0_i32 : i32, i32
  }
  func.func @transform_5(%arg0: i32) -> (i32, i32) {
    %c0_i32 = arith.constant 0 : i32
    %c0_i32_0 = arith.constant 0 : i32
    return %arg0, %c0_i32 : i32, i32
  }
}

</mosaic_0001>

<bundles_post_ra>
// kernel: tpu_custom_call.1
= control target key start
LH: loop header
LB: loop body
LE: loop exit
PB: predicated region body
PF: predicated region fallthrough
CT: control target
= control target key end

     0   :  { %vm191_vm0 = vcmask 1043456   ;;  %vm64_vm1 = vcmask 31744   ;;  %vm338_vm2 = vcmask 64512   ;;  %s821_s18 = smov 112   ;;  %s1718_s1 = inlined_call_operand.vmem [shape: f32[4,24], index: 1, kind: input, shape index: {}]   ;;  %s1719_s0 = inlined_call_operand.vmem [shape: f32[336,4], index: 0, kind: input, shape index: {}]   ;;  %s1720_s2 = inlined_call_operand.vmem [shape: f32[1,24], index: 2, kind: input, shape index: {}]   ;;  %s1721_s3 = inlined_call_operand.vmem [shape: f32[336,8], index: 3, kind: output, shape index: {0}]   ;;  %s1722_s4 = inlined_call_operand.vmem [shape: f32[336,8], index: 4, kind: output, shape index: {1}]   ;;  %s1723_s5 = inlined_call_operand.vmem [shape: f32[336,8], index: 5, kind: output, shape index: {2}]  }
   0x1   :  { %v59_v0 = vld [vmem:[%s1718_s1] sm:$0xf]  ;;  %v28_v2 = vld [vmem:[%s1719_s0 + $0x58] sm:$0xff]  ;;  %v39_v3 = vld [vmem:[%s1719_s0 + $0xb0] sm:$0xff] }
   0x2   :  { %v17_v1 = vld [vmem:[%s1719_s0] sm:$0xff]  ;;  %771 = vmatpush.msk.msra.mxu0 %vm191_vm0, %v59_v0  ;;  %814 = vmatpush.msk.msra.mxu1 %vm191_vm0, %v59_v0  ;;  %v50_v4 = vld [vmem:[%s1719_s0 + $0x108] sm:$0xff]  ;;  %v40_v6 = vld [vmem:[%s1719_s0 + $0xb8] sm:$0xff] }
   0x3   :  { %815 = vmatpush.msk.msra.mxu2 %vm191_vm0, %v59_v0  ;;  %772 = vmatmul.msk.f32.vlgmr.msra.gmra.mxu0 %vm64_vm1, %v17_v1  ;;  %v18_v5 = vld [vmem:[%s1719_s0 + $0x8] sm:$0xff]  ;;  %v29_v7 = vld [vmem:[%s1719_s0 + $0x60] sm:$0xff]  ;;  %v51_v8 = vld [vmem:[%s1719_s0 + $0x110] sm:$0xff] }
   0x4   :  { %783 = vmatmul.msk.f32.vlgmr.msra.gmra.mxu1 %vm64_vm1, %v28_v2  ;;  %794 = vmatmul.msk.f32.vlgmr.msra.gmra.mxu2 %vm64_vm1, %v39_v3  ;;  %v19_v9 = vld [vmem:[%s1719_s0 + $0x10] sm:$0xff]  ;;  %v30_v10 = vld [vmem:[%s1719_s0 + $0x68] sm:$0xff]  ;;  %v41_v11 = vld [vmem:[%s1719_s0 + $0xc0] sm:$0xff] }
   0x5   :  { %816 = vmatpush.msk.msra.mxu3 %vm191_vm0, %v59_v0  ;;  %v52_v12 = vld [vmem:[%s1719_s0 + $0x118] sm:$0xff]  ;;  %v31_v14 = vld [vmem:[%s1719_s0 + $0x70] sm:$0xff]  ;;  %v42_v15 = vld [vmem:[%s1719_s0 + $0xc8] sm:$0xff] }
   0x6   :  { %805 = vmatmul.msk.f32.vlgmr.msra.gmra.mxu3 %vm64_vm1, %v50_v4  ;;  %v20_v13 = vld [vmem:[%s1719_s0 + $0x18] sm:$0xff]  ;;  %v53_v16 = vld [vmem:[%s1719_s0 + $0x120] sm:$0xff]  ;;  %v43_v18 = vld [vmem:[%s1719_s0 + $0xd0] sm:$0xff] }
   0x7   :  { %v21_v17 = vld [vmem:[%s1719_s0 + $0x20] sm:$0xff]  ;;  %v32_v19 = vld [vmem:[%s1719_s0 + $0x78] sm:$0xff]  ;;  %v54_v20 = vld [vmem:[%s1719_s0 + $0x128] sm:$0xff] }
   0x8   :  { %v22_v21 = vld [vmem:[%s1719_s0 + $0x28] sm:$0xff]  ;;  %v44_v22 = vld [vmem:[%s1719_s0 + $0xd8] sm:$0xff]  ;;  %v33_v23 = vld [vmem:[%s1719_s0 + $0x80] sm:$0xff] }
   0x9   :  { %v55_v24 = vld [vmem:[%s1719_s0 + $0x130] sm:$0xff]  ;;  %v34_v25 = vld [vmem:[%s1719_s0 + $0x88] sm:$0xff]  ;;  %v45_v26 = vld [vmem:[%s1719_s0 + $0xe0] sm:$0xff] }
   0xa   :  { %v23_v27 = vld [vmem:[%s1719_s0 + $0x30] sm:$0xff]  ;;  %v46_v28 = vld [vmem:[%s1719_s0 + $0xe8] sm:$0xff]  ;;  %v56_v29 = vld [vmem:[%s1719_s0 + $0x138] sm:$0xff] }
   0xb   :  { %773 = vmatmul.msk.f32.gmra.mxu0 %vm64_vm1, %v18_v5  ;;  %v24_v30 = vld [vmem:[%s1719_s0 + $0x38] sm:$0xff]  ;;  %v35_v31 = vld [vmem:[%s1719_s0 + $0x90] sm:$0xff]  ;;  %v982_v32 = vld [vmem:[%s1720_s2] ss:$0 sm:$0xff]  ;;  %s820_s2 = smov 120  }
   0xc   :  { %795 = vmatmul.msk.f32.gmra.mxu2 %vm64_vm1, %v40_v6  ;;  %784 = vmatmul.msk.f32.gmra.mxu1 %vm64_vm1, %v29_v7  ;;  %v25_v37 = vld [vmem:[%s1719_s0 + $0x40] sm:$0xff]  ;;  %v47_v39 = vld [vmem:[%s1719_s0 + $0xf0] sm:$0xff]  ;;  %v58_v48 = vld [vmem:[%s1719_s0 + $0x148] sm:$0xff] }
   0xd   :  { %v57_v38 = vld [vmem:[%s1719_s0 + $0x140] sm:$0xff]  ;;  %v36_v49 = vld [vmem:[%s1719_s0 + $0x98] sm:$0xff]  ;;  %v26_v63 = vld [vmem:[%s1719_s0 + $0x48] sm:$0xff] }
   0xe   :  { %806 = vmatmul.msk.f32.gmra.mxu3 %vm64_vm1, %v51_v8  ;;  %v37_v0 = vld [vmem:[%s1719_s0 + $0xa0] sm:$0xff]  ;;  %v48_v2 = vld [vmem:[%s1719_s0 + $0xf8] sm:$0xff] }
   0xf   :  { %v49_v5 = vld [vmem:[%s1719_s0 + $0x100] sm:$0xff] }
  0x13   :  { %774 = vmatmul.msk.f32.gmra.mxu0 %vm64_vm1, %v19_v9 }
  0x14   :  { %785 = vmatmul.msk.f32.gmra.mxu1 %vm64_vm1, %v30_v10  ;;  %796 = vmatmul.msk.f32.gmra.mxu2 %vm64_vm1, %v41_v11  ;;  %v38_v10 = vld [vmem:[%s1719_s0 + $0xa8] sm:$0xff] }
  0x16   :  { %807 = vmatmul.msk.f32.gmra.mxu3 %vm64_vm1, %v52_v12 }
  0x1b   :  { %775 = vmatmul.msk.f32.gmra.mxu0 %vm64_vm1, %v20_v13  ;;  %v27_v13 = vld [vmem:[%s1719_s0 + $0x50] sm:$0xff] }
  0x1c   :  { %786 = vmatmul.msk.f32.gmra.mxu1 %vm64_vm1, %v31_v14  ;;  %797 = vmatmul.msk.f32.gmra.mxu2 %vm64_vm1, %v42_v15 }
  0x1e   :  { %808 = vmatmul.msk.f32.gmra.mxu3 %vm64_vm1, %v53_v16 }
  0x23   :  { %776 = vmatmul.msk.f32.gmra.mxu0 %vm64_vm1, %v21_v17 }
  0x24   :  { %798 = vmatmul.msk.f32.gmra.mxu2 %vm64_vm1, %v43_v18  ;;  %787 = vmatmul.msk.f32.gmra.mxu1 %vm64_vm1, %v32_v19 }
  0x26   :  { %809 = vmatmul.msk.f32.gmra.mxu3 %vm64_vm1, %v54_v20 }
  0x2b   :  { %777 = vmatmul.msk.f32.gmra.mxu0 %vm64_vm1, %v22_v21 }
  0x2c   :  { %799 = vmatmul.msk.f32.gmra.mxu2 %vm64_vm1, %v44_v22  ;;  %788 = vmatmul.msk.f32.gmra.mxu1 %vm64_vm1, %v33_v23 }
  0x2e   :  { %810 = vmatmul.msk.f32.gmra.mxu3 %vm64_vm1, %v55_v24 }
  0x33   :  { %778 = vmatmul.msk.f32.gmra.mxu0 %vm64_vm1, %v23_v27 }
  0x34   :  { %789 = vmatmul.msk.f32.gmra.mxu1 %vm64_vm1, %v34_v25  ;;  %800 = vmatmul.msk.f32.gmra.mxu2 %vm64_vm1, %v45_v26 }
  0x36   :  { %811 = vmatmul.msk.f32.gmra.mxu3 %vm64_vm1, %v56_v29 }
  0x3b   :  { %779 = vmatmul.msk.f32.gmra.mxu0 %vm64_vm1, %v24_v30 }
  0x3c   :  { %801 = vmatmul.msk.f32.gmra.mxu2 %vm64_vm1, %v46_v28  ;;  %790 = vmatmul.msk.f32.gmra.mxu1 %vm64_vm1, %v35_v31 }
  0x3e   :  { %812 = vmatmul.msk.f32.gmra.mxu3 %vm64_vm1, %v57_v38 }
  0x43   :  { %780 = vmatmul.msk.f32.gmra.mxu0 %vm64_vm1, %v25_v37 }
  0x44   :  { %802 = vmatmul.msk.f32.gmra.mxu2 %vm64_vm1, %v47_v39  ;;  %791 = vmatmul.msk.f32.gmra.mxu1 %vm64_vm1, %v36_v49 }
  0x46   :  { %813 = vmatmul.msk.f32.gmra.mxu3 %vm64_vm1, %v58_v48 }
  0x4b   :  { %781 = vmatmul.msk.f32.gmra.mxu0 %vm64_vm1, %v26_v63 }
  0x4c   :  { %792 = vmatmul.msk.f32.gmra.mxu1 %vm64_vm1, %v37_v0  ;;  %803 = vmatmul.msk.f32.gmra.mxu2 %vm64_vm1, %v48_v2 }
  0x53   :  { %782 = vmatmul.msk.f32.gmra.mxu0 %vm64_vm1, %v27_v13 }
  0x54   :  { %804 = vmatmul.msk.f32.gmra.mxu2 %vm64_vm1, %v49_v5  ;;  %793 = vmatmul.msk.f32.gmra.mxu1 %vm64_vm1, %v38_v10 }
  0x80   :  { %v212_v33 = vpop.f32.mrf.mxu0 }
  0x81   :  { %v213_v34 = vadd.f32 %v982_v32, %v212_v33  ;;  %v245_v35 = vpop.f32.mrf.mxu1 }
  0x82   :  { %v246_v36 = vadd.f32 %v982_v32, %v245_v35 }
  0x83   :  { %339 = vst.msk [vmem:[%s1721_s3] sm:$0xff] %vm338_vm2, %v213_v34  ;;  %423 = vrot.lane.b32.xlu0 %v213_v34, %s820_s2 }
  0x84   :  { %350 = vst.msk [vmem:[%s1721_s3 + $0x58] sm:$0xff] %vm338_vm2, %v246_v36  ;;  %445 = vrot.lane.b32.xlu2 %v246_v36, %s820_s2 }
  0x87   :  { %v278_v40 = vpop.f32.mrf.mxu2 }
  0x88   :  { %v279_v41 = vadd.f32 %v982_v32, %v278_v40  ;;  %v215_v42 = vpop.f32.mrf.mxu0 }
  0x89   :  { %v311_v43 = vpop.f32.mrf.mxu3  ;;  %v216_v44 = vadd.f32 %v982_v32, %v215_v42  ;;  %v248_v45 = vpop.f32.mrf.mxu1 }
  0x8a   :  { %361 = vst.msk [vmem:[%s1721_s3 + $0xb0] sm:$0xff] %vm338_vm2, %v279_v41  ;;  %467 = vrot.lane.b32.xlu1 %v279_v41, %s820_s2  ;;  %v312_v46 = vadd.f32 %v982_v32, %v311_v43  ;;  %v1022_v47 = vadd.f32 %v982_v32, %v248_v45 }
  0x8b   :  { %591 = vrot.lane.b32.xlu0 %v213_v34, %s821_s18  ;;  %340 = vst.msk [vmem:[%s1721_s3 + $0x8] sm:$0xff] %vm338_vm2, %v216_v44 }
  0x8c   :  { %613 = vrot.lane.b32.xlu2 %v246_v36, %s821_s18  ;;  %372 = vst.msk [vmem:[%s1721_s3 + $0x108] sm:$0xff] %vm338_vm2, %v312_v46 }
  0x8d   :  { %351 = vst.msk [vmem:[%s1721_s3 + $0x60] sm:$0xff] %vm338_vm2, %v1022_v47 }
  0x8f   :  { %v281_v50 = vpop.f32.mrf.mxu2 }
  0x90   :  { %v282_v51 = vadd.f32 %v982_v32, %v281_v50  ;;  %v218_v52 = vpop.f32.mrf.mxu0 }
  0x91   :  { %v314_v53 = vpop.f32.mrf.mxu3  ;;  %v219_v54 = vadd.f32 %v982_v32, %v218_v52  ;;  %v251_v55 = vpop.f32.mrf.mxu1 }
  0x92   :  { %362 = vst.msk [vmem:[%s1721_s3 + $0xb8] sm:$0xff] %vm338_vm2, %v282_v51  ;;  %635 = vrot.lane.b32.xlu1 %v279_v41, %s821_s18  ;;  %v315_v56 = vadd.f32 %v982_v32, %v314_v53  ;;  %v252_v57 = vadd.f32 %v982_v32, %v251_v55 }
  0x93   :  { %489 = vrot.lane.b32.xlu0 %v312_v46, %s820_s2  ;;  %341 = vst.msk [vmem:[%s1721_s3 + $0x10] sm:$0xff] %vm338_vm2, %v219_v54 }
  0x94   :  { %469 = vrot.lane.b32.xlu2 %v282_v51, %s820_s2  ;;  %373 = vst.msk [vmem:[%s1721_s3 + $0x110] sm:$0xff] %vm338_vm2, %v315_v56 }
  0x95   :  { %352 = vst.msk [vmem:[%s1721_s3 + $0x68] sm:$0xff] %vm338_vm2, %v252_v57 }
  0x97   :  { %v284_v58 = vpop.f32.mrf.mxu2 }
  0x98   :  { %v285_v59 = vadd.f32 %v982_v32, %v284_v58  ;;  %v221_v3 = vpop.f32.mrf.mxu0 }
  0x99   :  { %v317_v60 = vpop.f32.mrf.mxu3  ;;  %v254_v61 = vpop.f32.mrf.mxu1  ;;  %v222_v4 = vadd.f32 %v982_v32, %v221_v3 }
  0x9a   :  { %593 = vrot.lane.b32.xlu1 %v216_v44, %s821_s18  ;;  %v318_v62 = vadd.f32 %v982_v32, %v317_v60  ;;  %363 = vst.msk [vmem:[%s1721_s3 + $0xc0] sm:$0xff] %vm338_vm2, %v285_v59  ;;  %v255_v1 = vadd.f32 %v982_v32, %v254_v61 }
  0x9b   :  { %657 = vrot.lane.b32.xlu0 %v312_v46, %s821_s18  ;;  %342 = vst.msk [vmem:[%s1721_s3 + $0x18] sm:$0xff] %vm338_vm2, %v222_v4 }
  0x9c   :  { %637 = vrot.lane.b32.xlu2 %v282_v51, %s821_s18  ;;  %374 = vst.msk [vmem:[%s1721_s3 + $0x118] sm:$0xff] %vm338_vm2, %v318_v62 }
  0x9d   :  { %353 = vst.msk [vmem:[%s1721_s3 + $0x70] sm:$0xff] %vm338_vm2, %v255_v1 }
  0x9f   :  { %v287_v7 = vpop.f32.mrf.mxu2 }
  0xa0   :  { %v224_v6 = vpop.f32.mrf.mxu0  ;;  %v288_v9 = vadd.f32 %v982_v32, %v287_v7 }
  0xa1   :  { %v225_v8 = vadd.f32 %v982_v32, %v224_v6  ;;  %v320_v12 = vpop.f32.mrf.mxu3  ;;  %v257_v17 = vpop.f32.mrf.mxu1 }
  0xa2   :  { %491 = vrot.lane.b32.xlu1 %v315_v56, %s820_s2  ;;  %364 = vst.msk [vmem:[%s1721_s3 + $0xc8] sm:$0xff] %vm338_vm2, %v288_v9  ;;  %v321_v15 = vadd.f32 %v982_v32, %v320_v12  ;;  %v258_v19 = vadd.f32 %v982_v32, %v257_v17 }
  0xa3   :  { %425 = vrot.lane.b32.xlu0 %v216_v44, %s820_s2  ;;  %343 = vst.msk [vmem:[%s1721_s3 + $0x20] sm:$0xff] %vm338_vm2, %v225_v8 }
  0xa4   :  { %595 = vrot.lane.b32.xlu2 %v219_v54, %s821_s18  ;;  %375 = vst.msk [vmem:[%s1721_s3 + $0x120] sm:$0xff] %vm338_vm2, %v321_v15 }
  0xa5   :  { %354 = vst.msk [vmem:[%s1721_s3 + $0x78] sm:$0xff] %vm338_vm2, %v258_v19 }
  0xa7   :  { %v290_v11 = vpop.f32.mrf.mxu2 }
  0xa8   :  { %v291_v14 = vadd.f32 %v982_v32, %v290_v11  ;;  %v227_v16 = vpop.f32.mrf.mxu0 }
  0xa9   :  { %v228_v18 = vadd.f32 %v982_v32, %v227_v16  ;;  %v323_v20 = vpop.f32.mrf.mxu3  ;;  %v260_v26 = vpop.f32.mrf.mxu1 }
  0xaa   :  { %659 = vrot.lane.b32.xlu1 %v315_v56, %s821_s18  ;;  %365 = vst.msk [vmem:[%s1721_s3 + $0xd0] sm:$0xff] %vm338_vm2, %v291_v14  ;;  %v324_v21 = vadd.f32 %v982_v32, %v323_v20  ;;  %v261_v27 = vadd.f32 %v982_v32, %v260_v26 }
  0xab   :  { %447 = vrot.lane.b32.xlu0 %v1022_v47, %s820_s2  ;;  %344 = vst.msk [vmem:[%s1721_s3 + $0x28] sm:$0xff] %vm338_vm2, %v228_v18 }
  0xac   :  { %493 = vrot.lane.b32.xlu2 %v318_v62, %s820_s2  ;;  %376 = vst.msk [vmem:[%s1721_s3 + $0x128] sm:$0xff] %vm338_vm2, %v324_v21 }
  0xad   :  { %355 = vst.msk [vmem:[%s1721_s3 + $0x80] sm:$0xff] %vm338_vm2, %v261_v27 }
  0xaf   :  { %v293_v22 = vpop.f32.mrf.mxu2 }
  0xb0   :  { %v294_v24 = vadd.f32 %v982_v32, %v293_v22  ;;  %v230_v30 = vpop.f32.mrf.mxu0 }
  0xb1   :  { %v326_v23 = vpop.f32.mrf.mxu3  ;;  %v263_v29 = vpop.f32.mrf.mxu1  ;;  %v231_v33 = vadd.f32 %v982_v32, %v230_v30 }
  0xb2   :  { %427 = vrot.lane.b32.xlu1 %v219_v54, %s820_s2  ;;  %v327_v25 = vadd.f32 %v982_v32, %v326_v23  ;;  %366 = vst.msk [vmem:[%s1721_s3 + $0xd8] sm:$0xff] %vm338_vm2, %v294_v24  ;;  %v1194_v31 = vadd.f32 %v982_v32, %v263_v29 }
  0xb3   :  { %615 = vrot.lane.b32.xlu0 %v1022_v47, %s821_s18  ;;  %345 = vst.msk [vmem:[%s1721_s3 + $0x30] sm:$0xff] %vm338_vm2, %v231_v33 }
  0xb4   :  { %661 = vrot.lane.b32.xlu2 %v318_v62, %s821_s18  ;;  %377 = vst.msk [vmem:[%s1721_s3 + $0x130] sm:$0xff] %vm338_vm2, %v327_v25 }
  0xb5   :  { %356 = vst.msk [vmem:[%s1721_s3 + $0x88] sm:$0xff] %vm338_vm2, %v1194_v31 }
  0xb7   :  { %v296_v35 = vpop.f32.mrf.mxu2 }
  0xb8   :  { %v1213_v36 = vadd.f32 %v982_v32, %v296_v35  ;;  %v233_v44 = vpop.f32.mrf.mxu0 }
  0xb9   :  { %v329_v39 = vpop.f32.mrf.mxu3  ;;  %v1255_v45 = vadd.f32 %v982_v32, %v233_v44  ;;  %v266_v46 = vpop.f32.mrf.mxu1 }
  0xba   :  { %449 = vrot.lane.b32.xlu1 %v252_v57, %s820_s2  ;;  %367 = vst.msk [vmem:[%s1721_s3 + $0xe0] sm:$0xff] %vm338_vm2, %v1213_v36  ;;  %v1232_v41 = vadd.f32 %v982_v32, %v329_v39  ;;  %v1258_v47 = vadd.f32 %v982_v32, %v266_v46 }
  0xbb   :  { %471 = vrot.lane.b32.xlu0 %v285_v59, %s820_s2  ;;  %346 = vst.msk [vmem:[%s1721_s3 + $0x38] sm:$0xff] %vm338_vm2, %v1255_v45 }
  0xbc   :  { %451 = vrot.lane.b32.xlu2 %v255_v1, %s820_s2  ;;  %378 = vst.msk [vmem:[%s1721_s3 + $0x138] sm:$0xff] %vm338_vm2, %v1232_v41 }
  0xbd   :  { %357 = vst.msk [vmem:[%s1721_s3 + $0x90] sm:$0xff] %vm338_vm2, %v1258_v47 }
  0xbf   :  { %v299_v38 = vpop.f32.mrf.mxu2 }
  0xc0   :  { %v1228_v40 = vadd.f32 %v982_v32, %v299_v38  ;;  %v236_v51 = vpop.f32.mrf.mxu0 }
  0xc1   :  { %v1286_v52 = vadd.f32 %v982_v32, %v236_v51  ;;  %v332_v56 = vpop.f32.mrf.mxu3  ;;  %v269_v63 = vpop.f32.mrf.mxu1 }
  0xc2   :  { %617 = vrot.lane.b32.xlu1 %v252_v57, %s821_s18  ;;  %368 = vst.msk [vmem:[%s1721_s3 + $0xe8] sm:$0xff] %vm338_vm2, %v1228_v40  ;;  %v1310_v57 = vadd.f32 %v982_v32, %v332_v56  ;;  %v1343_v0 = vadd.f32 %v982_v32, %v269_v63 }
  0xc3   :  { %639 = vrot.lane.b32.xlu0 %v285_v59, %s821_s18  ;;  %347 = vst.msk [vmem:[%s1721_s3 + $0x40] sm:$0xff] %vm338_vm2, %v1286_v52 }
  0xc4   :  { %619 = vrot.lane.b32.xlu2 %v255_v1, %s821_s18  ;;  %379 = vst.msk [vmem:[%s1721_s3 + $0x140] sm:$0xff] %vm338_vm2, %v1310_v57 }
  0xc5   :  { %358 = vst.msk [vmem:[%s1721_s3 + $0x98] sm:$0xff] %vm338_vm2, %v1343_v0 }
  0xc7   :  { %v302_v58 = vpop.f32.mrf.mxu2 }
  0xc8   :  { %v1313_v59 = vadd.f32 %v982_v32, %v302_v58  ;;  %v239_v6 = vpop.f32.mrf.mxu0 }
  0xc9   :  { %v335_v1 = vpop.f32.mrf.mxu3  ;;  %v240_v7 = vadd.f32 %v982_v32, %v239_v6 }
  0xca   :  { %429 = vrot.lane.b32.xlu1 %v222_v4, %s820_s2  ;;  %369 = vst.msk [vmem:[%s1721_s3 + $0xf0] sm:$0xff] %vm338_vm2, %v1313_v59  ;;  %v1346_v2 = vadd.f32 %v982_v32, %v335_v1 }
  0xcb   :  { %597 = vrot.lane.b32.xlu0 %v222_v4, %s821_s18  ;;  %348 = vst.msk [vmem:[%s1721_s3 + $0x48] sm:$0xff] %vm338_vm2, %v240_v7 }
  0xcc   :  { %431 = vrot.lane.b32.xlu2 %v225_v8, %s820_s2  ;;  %380 = vst.msk [vmem:[%s1721_s3 + $0x148] sm:$0xff] %vm338_vm2, %v1346_v2 }
  0xcf   :  { %v305_v13 = vpop.f32.mrf.mxu2 }
  0xd2   :  { %473 = vrot.lane.b32.xlu1 %v288_v9, %s820_s2 }
  0xd3   :  { %495 = vrot.lane.b32.xlu0 %v321_v15, %s820_s2 }
  0xd4   :  { %475 = vrot.lane.b32.xlu2 %v291_v14, %s820_s2 }
  0xda   :  { %641 = vrot.lane.b32.xlu1 %v288_v9, %s821_s18 }
  0xdb   :  { %663 = vrot.lane.b32.xlu0 %v321_v15, %s821_s18 }
  0xdc   :  { %643 = vrot.lane.b32.xlu2 %v291_v14, %s821_s18  ;;  %v306_v14 = vadd.f32 %v982_v32, %v305_v13 }
  0xde   :  { %v446_v28 = vpop.permute.xlu2 %445  ;;  %370 = vst.msk [vmem:[%s1721_s3 + $0xf8] sm:$0xff] %vm338_vm2, %v306_v14 }
  0xdf   :  { %560 = vst.msk [vmem:[%s1722_s4 + $0x58] sm:$0xff] %vm338_vm2, %v446_v28 }
  0xe2   :  { %599 = vrot.lane.b32.xlu1 %v225_v8, %s821_s18  ;;  %v272_v8 = vpop.f32.mrf.mxu1 }
  0xe3   :  { %453 = vrot.lane.b32.xlu0 %v258_v19, %s820_s2  ;;  %v273_v9 = vadd.f32 %v982_v32, %v272_v8 }
  0xe4   :  { %433 = vrot.lane.b32.xlu2 %v228_v18, %s820_s2 }
  0xe5   :  { %359 = vst.msk [vmem:[%s1721_s3 + $0xa0] sm:$0xff] %vm338_vm2, %v273_v9 }
  0xe6   :  { %v614_v34 = vpop.permute.xlu2 %613 }
  0xe7   :  { %728 = vst.msk [vmem:[%s1723_s5 + $0x58] sm:$0xff] %vm338_vm2, %v614_v34 }
  0xea   :  { %497 = vrot.lane.b32.xlu1 %v324_v21, %s820_s2 }
  0xeb   :  { %621 = vrot.lane.b32.xlu0 %v258_v19, %s821_s18  ;;  %v308_v19 = vpop.f32.mrf.mxu2 }
  0xec   :  { %601 = vrot.lane.b32.xlu2 %v228_v18, %s821_s18  ;;  %v275_v18 = vpop.f32.mrf.mxu1 }
  0xed   :  { %v276_v20 = vadd.f32 %v982_v32, %v275_v18 }
  0xee   :  { %v470_v37 = vpop.permute.xlu2 %469 }
  0xef   :  { %572 = vst.msk [vmem:[%s1722_s4 + $0xb8] sm:$0xff] %vm338_vm2, %v470_v37 }
  0xf0   :  { %360 = vst.msk [vmem:[%s1721_s3 + $0xa8] sm:$0xff] %vm338_vm2, %v276_v20 }
  0xf2   :  { %665 = vrot.lane.b32.xlu1 %v324_v21, %s821_s18  ;;  %v309_v21 = vadd.f32 %v982_v32, %v308_v19 }
  0xf3   :  { %477 = vrot.lane.b32.xlu0 %v294_v24, %s820_s2 }
  0xf4   :  { %499 = vrot.lane.b32.xlu2 %v327_v25, %s820_s2  ;;  %371 = vst.msk [vmem:[%s1721_s3 + $0x100] sm:$0xff] %vm338_vm2, %v309_v21 }
  0xf5   :  { %v424_v42 = vpop.permute.xlu0 %423 }
  0xf6   :  { %v638_v43 = vpop.permute.xlu2 %637  ;;  %549 = vst.msk [vmem:[%s1722_s4] sm:$0xff] %vm338_vm2, %v424_v42 }
  0xf7   :  { %740 = vst.msk [vmem:[%s1723_s5 + $0xb8] sm:$0xff] %vm338_vm2, %v638_v43 }
  0xfa   :  { %455 = vrot.lane.b32.xlu1 %v261_v27, %s820_s2 }
  0xfb   :  { %645 = vrot.lane.b32.xlu0 %v294_v24, %s821_s18 }
  0xfc   :  { %v468_v48 = vpop.permute.xlu1 %467  ;;  %667 = vrot.lane.b32.xlu2 %v327_v25, %s821_s18  ;;  %v242_v25 = vpop.f32.mrf.mxu0 }
  0xfd   :  { %571 = vst.msk [vmem:[%s1722_s4 + $0xb0] sm:$0xff] %vm338_vm2, %v468_v48  ;;  %v592_v49 = vpop.permute.xlu0 %591  ;;  %v243_v26 = vadd.f32 %v982_v32, %v242_v25 }
  0xfe   :  { %v596_v50 = vpop.permute.xlu2 %595  ;;  %717 = vst.msk [vmem:[%s1723_s5] sm:$0xff] %vm338_vm2, %v592_v49 }
  0xff   :  { %719 = vst.msk [vmem:[%s1723_s5 + $0x10] sm:$0xff] %vm338_vm2, %v596_v50 }
 0x100   :  { %349 = vst.msk [vmem:[%s1721_s3 + $0x50] sm:$0xff] %vm338_vm2, %v243_v26 }
 0x102   :  { %623 = vrot.lane.b32.xlu1 %v261_v27, %s821_s18 }
 0x103   :  { %435 = vrot.lane.b32.xlu0 %v231_v33, %s820_s2 }
 0x104   :  { %v636_v53 = vpop.permute.xlu1 %635  ;;  %457 = vrot.lane.b32.xlu2 %v1194_v31, %s820_s2 }
 0x105   :  { %739 = vst.msk [vmem:[%s1723_s5 + $0xb0] sm:$0xff] %vm338_vm2, %v636_v53  ;;  %v490_v54 = vpop.permute.xlu0 %489 }
 0x106   :  { %v494_v55 = vpop.permute.xlu2 %493  ;;  %582 = vst.msk [vmem:[%s1722_s4 + $0x108] sm:$0xff] %vm338_vm2, %v490_v54 }
 0x107   :  { %584 = vst.msk [vmem:[%s1722_s4 + $0x118] sm:$0xff] %vm338_vm2, %v494_v55 }
 0x10a   :  { %479 = vrot.lane.b32.xlu1 %v1213_v36, %s820_s2 }
 0x10b   :  { %603 = vrot.lane.b32.xlu0 %v231_v33, %s821_s18 }
 0x10c   :  { %625 = vrot.lane.b32.xlu2 %v1194_v31, %s821_s18  ;;  %v594_v60 = vpop.permute.xlu1 %593 }
 0x10d   :  { %718 = vst.msk [vmem:[%s1723_s5 + $0x8] sm:$0xff] %vm338_vm2, %v594_v60  ;;  %v658_v61 = vpop.permute.xlu0 %657 }
 0x10e   :  { %v662_v62 = vpop.permute.xlu2 %661  ;;  %750 = vst.msk [vmem:[%s1723_s5 + $0x108] sm:$0xff] %vm338_vm2, %v658_v61 }
 0x10f   :  { %752 = vst.msk [vmem:[%s1723_s5 + $0x118] sm:$0xff] %vm338_vm2, %v662_v62 }
 0x112   :  { %647 = vrot.lane.b32.xlu1 %v1213_v36, %s821_s18 }
 0x113   :  { %501 = vrot.lane.b32.xlu0 %v1232_v41, %s820_s2 }
 0x114   :  { %481 = vrot.lane.b32.xlu2 %v1228_v40, %s820_s2  ;;  %v492_v3 = vpop.permute.xlu1 %491 }
 0x115   :  { %583 = vst.msk [vmem:[%s1722_s4 + $0x110] sm:$0xff] %vm338_vm2, %v492_v3  ;;  %v426_v4 = vpop.permute.xlu0 %425 }
 0x116   :  { %v452_v5 = vpop.permute.xlu2 %451  ;;  %550 = vst.msk [vmem:[%s1722_s4 + $0x8] sm:$0xff] %vm338_vm2, %v426_v4 }
 0x117   :  { %563 = vst.msk [vmem:[%s1722_s4 + $0x70] sm:$0xff] %vm338_vm2, %v452_v5 }
 0x11a   :  { %437 = vrot.lane.b32.xlu1 %v1255_v45, %s820_s2 }
 0x11b   :  { %459 = vrot.lane.b32.xlu0 %v1258_v47, %s820_s2 }
 0x11c   :  { %649 = vrot.lane.b32.xlu2 %v1228_v40, %s821_s18  ;;  %v660_v10 = vpop.permute.xlu1 %659 }
 0x11d   :  { %751 = vst.msk [vmem:[%s1723_s5 + $0x110] sm:$0xff] %vm338_vm2, %v660_v10  ;;  %v448_v11 = vpop.permute.xlu0 %447 }
 0x11e   :  { %v620_v12 = vpop.permute.xlu2 %619  ;;  %561 = vst.msk [vmem:[%s1722_s4 + $0x60] sm:$0xff] %vm338_vm2, %v448_v11 }
 0x11f   :  { %731 = vst.msk [vmem:[%s1723_s5 + $0x70] sm:$0xff] %vm338_vm2, %v620_v12 }
 0x122   :  { %605 = vrot.lane.b32.xlu1 %v1255_v45, %s821_s18 }
 0x123   :  { %627 = vrot.lane.b32.xlu0 %v1258_v47, %s821_s18 }
 0x124   :  { %439 = vrot.lane.b32.xlu2 %v1286_v52, %s820_s2  ;;  %v428_v15 = vpop.permute.xlu1 %427 }
 0x125   :  { %551 = vst.msk [vmem:[%s1722_s4 + $0x10] sm:$0xff] %vm338_vm2, %v428_v15  ;;  %v616_v16 = vpop.permute.xlu0 %615 }
 0x126   :  { %v432_v17 = vpop.permute.xlu2 %431  ;;  %729 = vst.msk [vmem:[%s1723_s5 + $0x60] sm:$0xff] %vm338_vm2, %v616_v16 }
 0x127   :  { %553 = vst.msk [vmem:[%s1722_s4 + $0x20] sm:$0xff] %vm338_vm2, %v432_v17 }
 0x12a   :  { %503 = vrot.lane.b32.xlu1 %v1310_v57, %s820_s2 }
 0x12b   :  { %483 = vrot.lane.b32.xlu0 %v1313_v59, %s820_s2 }
 0x12c   :  { %607 = vrot.lane.b32.xlu2 %v1286_v52, %s821_s18  ;;  %v450_v22 = vpop.permute.xlu1 %449 }
 0x12d   :  { %562 = vst.msk [vmem:[%s1722_s4 + $0x68] sm:$0xff] %vm338_vm2, %v450_v22  ;;  %v472_v23 = vpop.permute.xlu0 %471 }
 0x12e   :  { %v476_v24 = vpop.permute.xlu2 %475  ;;  %573 = vst.msk [vmem:[%s1722_s4 + $0xc0] sm:$0xff] %vm338_vm2, %v472_v23 }
 0x12f   :  { %575 = vst.msk [vmem:[%s1722_s4 + $0xd0] sm:$0xff] %vm338_vm2, %v476_v24 }
 0x132   :  { %461 = vrot.lane.b32.xlu1 %v1343_v0, %s820_s2 }
 0x133   :  { %651 = vrot.lane.b32.xlu0 %v1313_v59, %s821_s18 }
 0x134   :  { %505 = vrot.lane.b32.xlu2 %v1346_v2, %s820_s2  ;;  %v618_v27 = vpop.permute.xlu1 %617 }
 0x135   :  { %730 = vst.msk [vmem:[%s1723_s5 + $0x68] sm:$0xff] %vm338_vm2, %v618_v27  ;;  %v640_v32 = vpop.permute.xlu0 %639 }
 0x136   :  { %v644_v28 = vpop.permute.xlu2 %643  ;;  %741 = vst.msk [vmem:[%s1723_s5 + $0xc0] sm:$0xff] %vm338_vm2, %v640_v32 }
 0x137   :  { %743 = vst.msk [vmem:[%s1723_s5 + $0xd0] sm:$0xff] %vm338_vm2, %v644_v28 }
 0x13a   :  { %629 = vrot.lane.b32.xlu1 %v1343_v0, %s821_s18 }
 0x13b   :  { %441 = vrot.lane.b32.xlu0 %v240_v7, %s820_s2 }
 0x13c   :  { %463 = vrot.lane.b32.xlu2 %v273_v9, %s820_s2  ;;  %v430_v29 = vpop.permute.xlu1 %429 }
 0x13d   :  { %552 = vst.msk [vmem:[%s1722_s4 + $0x18] sm:$0xff] %vm338_vm2, %v430_v29  ;;  %v598_v30 = vpop.permute.xlu0 %597 }
 0x13e   :  { %v434_v31 = vpop.permute.xlu2 %433  ;;  %720 = vst.msk [vmem:[%s1723_s5 + $0x18] sm:$0xff] %vm338_vm2, %v598_v30 }
 0x13f   :  { %554 = vst.msk [vmem:[%s1722_s4 + $0x28] sm:$0xff] %vm338_vm2, %v434_v31 }
 0x142   :  { %485 = vrot.lane.b32.xlu1 %v306_v14, %s820_s2 }
 0x143   :  { %609 = vrot.lane.b32.xlu0 %v240_v7, %s821_s18 }
 0x144   :  { %631 = vrot.lane.b32.xlu2 %v273_v9, %s821_s18  ;;  %v474_v33 = vpop.permute.xlu1 %473 }
 0x145   :  { %574 = vst.msk [vmem:[%s1722_s4 + $0xc8] sm:$0xff] %vm338_vm2, %v474_v33  ;;  %v496_v34 = vpop.permute.xlu0 %495 }
 0x146   :  { %v602_v35 = vpop.permute.xlu2 %601  ;;  %585 = vst.msk [vmem:[%s1722_s4 + $0x120] sm:$0xff] %vm338_vm2, %v496_v34 }
 0x147   :  { %722 = vst.msk [vmem:[%s1723_s5 + $0x28] sm:$0xff] %vm338_vm2, %v602_v35 }
 0x14a   :  { %653 = vrot.lane.b32.xlu1 %v306_v14, %s821_s18 }
 0x14b   :  { %465 = vrot.lane.b32.xlu0 %v276_v20, %s820_s2 }
 0x14c   :  { %487 = vrot.lane.b32.xlu2 %v309_v21, %s820_s2  ;;  %v642_v36 = vpop.permute.xlu1 %641 }
 0x14d   :  { %742 = vst.msk [vmem:[%s1723_s5 + $0xc8] sm:$0xff] %vm338_vm2, %v642_v36  ;;  %v664_v37 = vpop.permute.xlu0 %663 }
 0x14e   :  { %v500_v38 = vpop.permute.xlu2 %499  ;;  %753 = vst.msk [vmem:[%s1723_s5 + $0x120] sm:$0xff] %vm338_vm2, %v664_v37 }
 0x14f   :  { %587 = vst.msk [vmem:[%s1722_s4 + $0x130] sm:$0xff] %vm338_vm2, %v500_v38 }
 0x152   :  { %443 = vrot.lane.b32.xlu1 %v243_v26, %s820_s2 }
 0x153   :  { %633 = vrot.lane.b32.xlu0 %v276_v20, %s821_s18 }
 0x154   :  { %655 = vrot.lane.b32.xlu2 %v309_v21, %s821_s18  ;;  %v600_v39 = vpop.permute.xlu1 %599 }
 0x155   :  { %721 = vst.msk [vmem:[%s1723_s5 + $0x20] sm:$0xff] %vm338_vm2, %v600_v39  ;;  %v454_v40 = vpop.permute.xlu0 %453 }
 0x156   :  { %v668_v42 = vpop.permute.xlu2 %667  ;;  %564 = vst.msk [vmem:[%s1722_s4 + $0x78] sm:$0xff] %vm338_vm2, %v454_v40 }
 0x157   :  { %755 = vst.msk [vmem:[%s1723_s5 + $0x130] sm:$0xff] %vm338_vm2, %v668_v42 }
 0x15a   :  { %611 = vrot.lane.b32.xlu1 %v243_v26, %s821_s18 }
 0x15b   :  { %669 = vrot.lane.b32.xlu0 %v1232_v41, %s821_s18 }
 0x15c   :  { %673 = vrot.lane.b32.xlu2 %v1346_v2, %s821_s18  ;;  %v498_v43 = vpop.permute.xlu1 %497 }
 0x15d   :  { %586 = vst.msk [vmem:[%s1722_s4 + $0x128] sm:$0xff] %vm338_vm2, %v498_v43  ;;  %v622_v44 = vpop.permute.xlu0 %621 }
 0x15e   :  { %v458_v45 = vpop.permute.xlu2 %457  ;;  %732 = vst.msk [vmem:[%s1723_s5 + $0x78] sm:$0xff] %vm338_vm2, %v622_v44 }
 0x15f   :  { %566 = vst.msk [vmem:[%s1722_s4 + $0x88] sm:$0xff] %vm338_vm2, %v458_v45 }
 0x162   :  { %671 = vrot.lane.b32.xlu1 %v1310_v57, %s821_s18 }
 0x164   :  { %v666_v41 = vpop.permute.xlu1 %665 }
 0x165   :  { %754 = vst.msk [vmem:[%s1723_s5 + $0x128] sm:$0xff] %vm338_vm2, %v666_v41  ;;  %v478_v46 = vpop.permute.xlu0 %477 }
 0x166   :  { %v626_v47 = vpop.permute.xlu2 %625  ;;  %576 = vst.msk [vmem:[%s1722_s4 + $0xd8] sm:$0xff] %vm338_vm2, %v478_v46 }
 0x167   :  { %734 = vst.msk [vmem:[%s1723_s5 + $0x88] sm:$0xff] %vm338_vm2, %v626_v47 }
 0x16c   :  { %v456_v48 = vpop.permute.xlu1 %455 }
 0x16d   :  { %565 = vst.msk [vmem:[%s1722_s4 + $0x80] sm:$0xff] %vm338_vm2, %v456_v48  ;;  %v646_v49 = vpop.permute.xlu0 %645 }
 0x16e   :  { %v482_v50 = vpop.permute.xlu2 %481  ;;  %744 = vst.msk [vmem:[%s1723_s5 + $0xd8] sm:$0xff] %vm338_vm2, %v646_v49 }
 0x16f   :  { %578 = vst.msk [vmem:[%s1722_s4 + $0xe8] sm:$0xff] %vm338_vm2, %v482_v50 }
 0x174   :  { %v624_v51 = vpop.permute.xlu1 %623 }
 0x175   :  { %733 = vst.msk [vmem:[%s1723_s5 + $0x80] sm:$0xff] %vm338_vm2, %v624_v51  ;;  %v436_v52 = vpop.permute.xlu0 %435 }
 0x176   :  { %v650_v53 = vpop.permute.xlu2 %649  ;;  %555 = vst.msk [vmem:[%s1722_s4 + $0x30] sm:$0xff] %vm338_vm2, %v436_v52 }
 0x177   :  { %746 = vst.msk [vmem:[%s1723_s5 + $0xe8] sm:$0xff] %vm338_vm2, %v650_v53 }
 0x17c   :  { %v480_v54 = vpop.permute.xlu1 %479 }
 0x17d   :  { %577 = vst.msk [vmem:[%s1722_s4 + $0xe0] sm:$0xff] %vm338_vm2, %v480_v54  ;;  %v604_v55 = vpop.permute.xlu0 %603 }
 0x17e   :  { %v440_v56 = vpop.permute.xlu2 %439  ;;  %723 = vst.msk [vmem:[%s1723_s5 + $0x30] sm:$0xff] %vm338_vm2, %v604_v55 }
 0x17f   :  { %557 = vst.msk [vmem:[%s1722_s4 + $0x40] sm:$0xff] %vm338_vm2, %v440_v56 }
 0x184   :  { %v648_v57 = vpop.permute.xlu1 %647 }
 0x185   :  { %745 = vst.msk [vmem:[%s1723_s5 + $0xe0] sm:$0xff] %vm338_vm2, %v648_v57  ;;  %v502_v58 = vpop.permute.xlu0 %501 }
 0x186   :  { %v608_v59 = vpop.permute.xlu2 %607  ;;  %588 = vst.msk [vmem:[%s1722_s4 + $0x138] sm:$0xff] %vm338_vm2, %v502_v58 }
 0x187   :  { %725 = vst.msk [vmem:[%s1723_s5 + $0x40] sm:$0xff] %vm338_vm2, %v608_v59 }
 0x18c   :  { %v438_v60 = vpop.permute.xlu1 %437 }
 0x18d   :  { %556 = vst.msk [vmem:[%s1722_s4 + $0x38] sm:$0xff] %vm338_vm2, %v438_v60  ;;  %v460_v61 = vpop.permute.xlu0 %459 }
 0x18e   :  { %v506_v62 = vpop.permute.xlu2 %505  ;;  %567 = vst.msk [vmem:[%s1722_s4 + $0x90] sm:$0xff] %vm338_vm2, %v460_v61 }
 0x18f   :  { %590 = vst.msk [vmem:[%s1722_s4 + $0x148] sm:$0xff] %vm338_vm2, %v506_v62 }
 0x194   :  { %v606_v63 = vpop.permute.xlu1 %605 }
 0x195   :  { %724 = vst.msk [vmem:[%s1723_s5 + $0x38] sm:$0xff] %vm338_vm2, %v606_v63  ;;  %v628_v0 = vpop.permute.xlu0 %627 }
 0x196   :  { %v464_v1 = vpop.permute.xlu2 %463  ;;  %735 = vst.msk [vmem:[%s1723_s5 + $0x90] sm:$0xff] %vm338_vm2, %v628_v0 }
 0x197   :  { %569 = vst.msk [vmem:[%s1722_s4 + $0xa0] sm:$0xff] %vm338_vm2, %v464_v1 }
 0x19c   :  { %v504_v2 = vpop.permute.xlu1 %503 }
 0x19d   :  { %589 = vst.msk [vmem:[%s1722_s4 + $0x140] sm:$0xff] %vm338_vm2, %v504_v2  ;;  %v484_v3 = vpop.permute.xlu0 %483 }
 0x19e   :  { %v632_v4 = vpop.permute.xlu2 %631  ;;  %579 = vst.msk [vmem:[%s1722_s4 + $0xf0] sm:$0xff] %vm338_vm2, %v484_v3 }
 0x19f   :  { %737 = vst.msk [vmem:[%s1723_s5 + $0xa0] sm:$0xff] %vm338_vm2, %v632_v4 }
 0x1a4   :  { %v462_v5 = vpop.permute.xlu1 %461 }
 0x1a5   :  { %568 = vst.msk [vmem:[%s1722_s4 + $0x98] sm:$0xff] %vm338_vm2, %v462_v5  ;;  %v652_v6 = vpop.permute.xlu0 %651 }
 0x1a6   :  { %v488_v7 = vpop.permute.xlu2 %487  ;;  %747 = vst.msk [vmem:[%s1723_s5 + $0xf0] sm:$0xff] %vm338_vm2, %v652_v6 }
 0x1a7   :  { %581 = vst.msk [vmem:[%s1722_s4 + $0x100] sm:$0xff] %vm338_vm2, %v488_v7 }
 0x1ac   :  { %v630_v8 = vpop.permute.xlu1 %629 }
 0x1ad   :  { %736 = vst.msk [vmem:[%s1723_s5 + $0x98] sm:$0xff] %vm338_vm2, %v630_v8  ;;  %v442_v9 = vpop.permute.xlu0 %441 }
 0x1ae   :  { %v656_v10 = vpop.permute.xlu2 %655  ;;  %558 = vst.msk [vmem:[%s1722_s4 + $0x48] sm:$0xff] %vm338_vm2, %v442_v9 }
 0x1af   :  { %749 = vst.msk [vmem:[%s1723_s5 + $0x100] sm:$0xff] %vm338_vm2, %v656_v10 }
 0x1b4   :  { %v486_v11 = vpop.permute.xlu1 %485 }
 0x1b5   :  { %580 = vst.msk [vmem:[%s1722_s4 + $0xf8] sm:$0xff] %vm338_vm2, %v486_v11  ;;  %v610_v12 = vpop.permute.xlu0 %609 }
 0x1b6   :  { %v674_v13 = vpop.permute.xlu2 %673  ;;  %726 = vst.msk [vmem:[%s1723_s5 + $0x48] sm:$0xff] %vm338_vm2, %v610_v12 }
 0x1b7   :  { %758 = vst.msk [vmem:[%s1723_s5 + $0x148] sm:$0xff] %vm338_vm2, %v674_v13 }
 0x1bc   :  { %v654_v14 = vpop.permute.xlu1 %653 }
 0x1bd   :  { %748 = vst.msk [vmem:[%s1723_s5 + $0xf8] sm:$0xff] %vm338_vm2, %v654_v14  ;;  %v466_v15 = vpop.permute.xlu0 %465 }
 0x1be   :  { %570 = vst.msk [vmem:[%s1722_s4 + $0xa8] sm:$0xff] %vm338_vm2, %v466_v15 }
 0x1c4   :  { %v444_v16 = vpop.permute.xlu1 %443 }
 0x1c5   :  { %559 = vst.msk [vmem:[%s1722_s4 + $0x50] sm:$0xff] %vm338_vm2, %v444_v16  ;;  %v634_v17 = vpop.permute.xlu0 %633 }
 0x1c6   :  { %738 = vst.msk [vmem:[%s1723_s5 + $0xa8] sm:$0xff] %vm338_vm2, %v634_v17 }
 0x1cc   :  { %v612_v18 = vpop.permute.xlu1 %611 }
 0x1cd   :  { %727 = vst.msk [vmem:[%s1723_s5 + $0x50] sm:$0xff] %vm338_vm2, %v612_v18  ;;  %v670_v19 = vpop.permute.xlu0 %669 }
 0x1ce   :  { %756 = vst.msk [vmem:[%s1723_s5 + $0x138] sm:$0xff] %vm338_vm2, %v670_v19 }
 0x1d4   :  { %v672_v20 = vpop.permute.xlu1 %671 }
 0x1d5   :  { %757 = vst.msk [vmem:[%s1723_s5 + $0x140] sm:$0xff] %vm338_vm2, %v672_v20 }

</bundles_post_ra>
